<compile_context>
chip_gen: v5e
topology: v5e:2x2
jax: 0.10.0
libtpu: 0.0.40
codegen_flags: <defaults>
</compile_context>

<pallas_src>
import functools

import jax
import jax.numpy as jnp
from jax.experimental import pallas as pl
from jax.experimental.pallas import tpu as pltpu


def _round_up(n, m):
    return ((n + m - 1) // m) * m


def _multi_feature_nn_kernel(d0, d1, d2, x_ref, aux_ref, w1_ref, w2_ref,
                             w3_ref, o_ref):
    """One batch tile through the fused (block-diagonal) network.

    x_ref  : (tb, 1)   f32   per-row scalar feature value
    aux_ref: (4, Wmax) f32   row0 = W0_cat, row1 = c0, row2 = c1, row3 = c2
    w1_ref : (d0, d1)  bf16  block-diag of the S first hidden layers
    w2_ref : (d1, d2)  bf16  block-diag of the S second hidden layers
    w3_ref : (d2, Tp)  bf16  fused per-subnet output Linear x mixing Linear
    o_ref  : (tb, Tp)  bf16  lane-padded output (first num_tasks lanes real)
    """
    x = x_ref[...]                                    # (tb, 1) f32
    aux = aux_ref[...]                                # (4, Wmax) f32
    w0 = aux[0:1, :d0]                                # (1, d0)
    c0 = aux[1:2, :d0]
    c1 = aux[2:3, :d1]
    c2 = aux[3:4, :d2]

    # Layer 0 (input_shape == 1): matmul degenerates to a broadcast FMA (VPU).
    h = jnp.maximum(x * w0 + c0, 0.0)                 # (tb, d0) f32
    # Layers 1 & 2: block-diagonal bf16 MXU matmuls (f32 accumulation).
    # Bias add + ReLU kept in f32; cast to bf16 only right before each dot.
    h = jnp.dot(h.astype(jnp.bfloat16), w1_ref[...],
                preferred_element_type=jnp.float32)
    h = jnp.maximum(h + c1, 0.0)
    h = jnp.dot(h.astype(jnp.bfloat16), w2_ref[...],
                preferred_element_type=jnp.float32)
    h = jnp.maximum(h + c2, 0.0)
    # Fused per-subnet output Linear + mixing Linear, lane-padded bf16 output.
    o_ref[...] = jnp.dot(h.astype(jnp.bfloat16), w3_ref[...],
                         preferred_element_type=jnp.float32).astype(o_ref.dtype)
    # TODO(synk): training-mode dropout (applied after every layer) is not
    # implemented; eval-mode dropout is the identity, which this computes.


def pack_params(params):
    """One-time fusion of per-subnet torch-shaped parameters into lane-dense,
    block-diagonal kernel operands (bias folding, subnet merge, output fuse).
    Matmul weights are stored in bf16; biases / layer-0 weights stay f32."""
    w0, b0, w1, b1, w2, b2, w3t, wl = params
    S, _, U = w0.shape
    H1 = w1.shape[2]
    H2 = w2.shape[2]
    T = wl.shape[2]

    d0 = _round_up(S * U, 128)
    d1 = _round_up(S * H1, 128)
    d2 = _round_up(S * H2, 128)
    tp = _round_up(max(T, 1), 128)

    def pad_to(a, rows, cols):
        return jnp.pad(a, ((0, rows - a.shape[0]), (0, cols - a.shape[1])))

    # Layer 0: concat subnet output columns; fold bias: (x-b)@W = x@W + (-b@W).
    w0_cat = pad_to(jnp.concatenate([w0[s] for s in range(S)], axis=1), 1, d0)
    c0 = pad_to(jnp.concatenate([-b0[s] @ w0[s] for s in range(S)], axis=1), 1, d0)
    # Hidden layers: block-diagonal weights + folded biases.
    w1_bd = pad_to(jax.scipy.linalg.block_diag(*[w1[s] for s in range(S)]), d0, d1)
    c1 = pad_to(jnp.concatenate([-b1[s] @ w1[s] for s in range(S)], axis=1), 1, d1)
    w2_bd = pad_to(jax.scipy.linalg.block_diag(*[w2[s] for s in range(S)]), d1, d2)
    c2 = pad_to(jnp.concatenate([-b2[s] @ w2[s] for s in range(S)], axis=1), 1, d2)
    # Fuse per-subnet Linear(H2->1) with mixing Linear(S->T): (S*H2, T).
    w3wl = pad_to(jnp.concatenate([w3t[s].T @ wl[s] for s in range(S)], axis=0),
                  d2, tp)

    wmax = max(d0, d1, d2)
    aux = jnp.zeros((4, wmax), jnp.float32)
    aux = aux.at[0, :d0].set(w0_cat[0])
    aux = aux.at[1, :d0].set(c0[0])
    aux = aux.at[2, :d1].set(c1[0])
    aux = aux.at[3, :d2].set(c2[0])

    packed = (aux.astype(jnp.float32),
              w1_bd.astype(jnp.bfloat16),
              w2_bd.astype(jnp.bfloat16),
              w3wl.astype(jnp.bfloat16))
    dims = dict(d0=d0, d1=d1, d2=d2, tp=tp, num_tasks=T)
    return packed, dims


def multi_feature_nn(x, packed, dims, *, block_b=1024, min_rows_per_core=256):
    """Pallas wrapper. x: (B,) float32 -> (B, 1, num_tasks) float32."""
    aux, w1_bd, w2_bd, w3wl = packed
    d0, d1, d2, tp = dims["d0"], dims["d1"], dims["d2"], dims["tp"]
    T = dims["num_tasks"]
    B = x.shape[0]

    # Balanced batch tiles (no nearly-empty tail); for mid/large batches force
    # >= 2 grid steps so both v7x TensorCores are used. Tiles are multiples of
    # 16 rows so the bf16 output block packs cleanly on sublanes.
    n_tiles = pl.cdiv(B, block_b)
    if n_tiles < 2 and B >= 2 * min_rows_per_core:
        n_tiles = 2
    bb = _round_up(pl.cdiv(B, n_tiles), 16)
    b_pad = bb * n_tiles

    x2 = x.reshape(B, 1).astype(jnp.float32)
    if b_pad != B:
        x2 = jnp.pad(x2, ((0, b_pad - B), (0, 0)))

    kernel = functools.partial(_multi_feature_nn_kernel, d0, d1, d2)

    def full_spec(shape):
        n = len(shape)
        return pl.BlockSpec(shape, lambda i, _n=n: (0,) * _n)

    flops = 2 * b_pad * (d0 + d0 * d1 + d1 * d2 + d2 * tp)
    bytes_accessed = (4 * b_pad * 1                      # x (f32)
                      + 4 * aux.size                     # aux (f32)
                      + 2 * (w1_bd.size + w2_bd.size + w3wl.size)   # bf16 weights
                      + 2 * b_pad * tp)                  # bf16 padded output

    out = pl.pallas_call(
        kernel,
        out_shape=jax.ShapeDtypeStruct((b_pad, tp), jnp.bfloat16),
        grid_spec=pltpu.PrefetchScalarGridSpec(
            num_scalar_prefetch=0,
            grid=(n_tiles,),
            in_specs=[
                pl.BlockSpec((bb, 1), lambda i: (i, 0)),     # x tile
                full_spec(aux.shape),                        # fused biases + W0
                full_spec(w1_bd.shape),                      # block-diag W1
                full_spec(w2_bd.shape),                      # block-diag W2
                full_spec(w3wl.shape),                       # fused W3 x Wl
            ],
            out_specs=pl.BlockSpec((bb, tp), lambda i: (i, 0)),
        ),
        compiler_params=pltpu.CompilerParams(
            dimension_semantics=("parallel",)),
        cost_estimate=pl.CostEstimate(flops=flops, transcendentals=0,
                                      bytes_accessed=bytes_accessed),
    )(x2, aux, w1_bd, w2_bd, w3wl)
    # Drop batch/lane padding, restore torch output shape (B, 1, num_tasks).
    return out[:B, :T].astype(jnp.float32).reshape(B, 1, T)


def init_params(key, *, input_shape=1, num_units=64, hidden_sizes=(64, 32),
                num_subnets=4, num_tasks=3, output_shape=1):
    """Deterministic synthetic parameters with the module's shapes, stacked
    along a leading num_subnets axis (last per-subnet Linear stored as (1,H2),
    mixing Linear stored column-wise as (S, 1, T))."""
    assert output_shape == 1
    h1, h2 = hidden_sizes
    ks = jax.random.split(key, 9)
    s = num_subnets

    def n(k, shape, scale):
        return (scale * jax.random.normal(k, shape)).astype(jnp.float32)

    w0 = n(ks[0], (s, input_shape, num_units), 1.0)           # LinReLU.weights
    b0 = n(ks[1], (s, 1, input_shape), 0.5)                   # LinReLU.bias
    w1 = n(ks[2], (s, num_units, h1), 1.0 / jnp.sqrt(num_units))
    b1 = n(ks[3], (s, 1, num_units), 0.5)
    w2 = n(ks[4], (s, h1, h2), 1.0 / jnp.sqrt(h1))
    b2 = n(ks[5], (s, 1, h1), 0.5)
    w3t = n(ks[6], (s, output_shape, h2), 1.0 / jnp.sqrt(h2)) # Linear (out,in)
    wl = n(ks[7], (s, 1, num_tasks), 1.0 / jnp.sqrt(s))       # col s of (T,S)
    return (w0, b0, w1, b1, w2, b2, w3t, wl)


def reference(x, params):
    """Plain-JAX f32 reference matching the PyTorch forward (eval mode)."""
    w0, b0, w1, b1, w2, b2, w3t, wl = params
    B = x.shape[0]
    x2 = x.reshape(B, 1).astype(jnp.float32)
    outs = []
    for s in range(w0.shape[0]):
        h = jax.nn.relu((x2 - b0[s]) @ w0[s])
        h = jax.nn.relu((h - b1[s]) @ w1[s])
        h = jax.nn.relu((h - b2[s]) @ w2[s])
        outs.append(h @ w3t[s].T)                             # (B, 1)
    stacked = jnp.stack(outs, axis=-1)                        # (B, 1, S)
    return stacked @ wl[:, 0, :]                              # (B, 1, T)


if __name__ == "__main__":
    key = jax.random.PRNGKey(0)
    k_param, k_x = jax.random.split(key)

    B = 64
    params = init_params(k_param, input_shape=1, num_units=64,
                         hidden_sizes=(64, 32), num_subnets=4, num_tasks=3)
    x = jax.random.normal(k_x, (B,), dtype=jnp.float32)

    packed, dims = pack_params(params)
    run = jax.jit(functools.partial(multi_feature_nn, dims=dims, block_b=1024))
    out = jax.block_until_ready(run(x, packed))

    ref = reference(x, params)
    assert out.shape == ref.shape == (B, 1, 3), (out.shape, ref.shape)
    # bf16 MXU matmuls + bf16 output + fusion reassociation -> looser tolerance.
    max_err = float(jnp.max(jnp.abs(out - ref)))
    assert jnp.allclose(out, ref, rtol=5e-2, atol=5e-2), max_err
    print("KERNEL_OK")
</pallas_src>

<mosaic_0001>
module attributes {stable_mosaic.version = 11 : i64} {
  func.func @_multi_feature_nn_kernel(%arg0: i32, %arg1: memref<64x1xf32, #tpu.memory_space<vmem>>, %arg2: memref<4x256xf32, #tpu.memory_space<vmem>>, %arg3: memref<256x256xbf16, #tpu.memory_space<vmem>>, %arg4: memref<256x128xbf16, #tpu.memory_space<vmem>>, %arg5: memref<128x128xbf16, #tpu.memory_space<vmem>>, %arg6: memref<64x128xbf16, #tpu.memory_space<vmem>>) attributes {dimension_semantics = [#tpu.dimension_semantics<parallel>], iteration_bounds = array<i64: 1>, scalar_prefetch = 0 : i64, scratch_operands = 0 : i64, tpu.core_type = #tpu.core_type<tc>, window_params = [{transform_indices = @transform_0, window_bounds = array<i64: 64, 1>}, {pipeline_mode = #tpu.pipeline_mode<synchronous>, transform_indices = @transform_1, window_bounds = array<i64: 4, 256>}, {pipeline_mode = #tpu.pipeline_mode<synchronous>, transform_indices = @transform_2, window_bounds = array<i64: 256, 256>}, {pipeline_mode = #tpu.pipeline_mode<synchronous>, transform_indices = @transform_3, window_bounds = array<i64: 256, 128>}, {pipeline_mode = #tpu.pipeline_mode<synchronous>, transform_indices = @transform_4, window_bounds = array<i64: 128, 128>}, {transform_indices = @transform_5, window_bounds = array<i64: 64, 128>}]} {
    %c0 = arith.constant 0 : index
    %c0_0 = arith.constant 0 : index
    %0 = vector.load %arg1[%c0, %c0_0] : memref<64x1xf32, #tpu.memory_space<vmem>>, vector<64x1xf32>
    %c0_1 = arith.constant 0 : index
    %c0_2 = arith.constant 0 : index
    %1 = vector.load %arg2[%c0_1, %c0_2] : memref<4x256xf32, #tpu.memory_space<vmem>>, vector<4x256xf32>
    %2 = vector.extract_strided_slice %1 {offsets = [0, 0], sizes = [1, 256], strides = [1, 1]} : vector<4x256xf32> to vector<1x256xf32>
    %3 = vector.extract_strided_slice %1 {offsets = [1, 0], sizes = [1, 256], strides = [1, 1]} : vector<4x256xf32> to vector<1x256xf32>
    %4 = vector.extract_strided_slice %1 {offsets = [2, 0], sizes = [1, 256], strides = [1, 1]} : vector<4x256xf32> to vector<1x256xf32>
    %5 = vector.extract_strided_slice %1 {offsets = [3, 0], sizes = [1, 128], strides = [1, 1]} : vector<4x256xf32> to vector<1x128xf32>
    %6 = vector.broadcast %0 : vector<64x1xf32> to vector<64x256xf32>
    %7 = vector.broadcast %2 : vector<1x256xf32> to vector<64x256xf32>
    %8 = arith.mulf %6, %7 : vector<64x256xf32>
    %9 = vector.broadcast %3 : vector<1x256xf32> to vector<64x256xf32>
    %10 = arith.addf %8, %9 : vector<64x256xf32>
    %cst = arith.constant 0.000000e+00 : f32
    %11 = vector.broadcast %cst : f32 to vector<64x256xf32>
    %12 = arith.maximumf %10, %11 : vector<64x256xf32>
    %13 = arith.truncf %12 : vector<64x256xf32> to vector<64x256xbf16>
    %c0_3 = arith.constant 0 : index
    %c0_4 = arith.constant 0 : index
    %14 = vector.load %arg3[%c0_3, %c0_4] : memref<256x256xbf16, #tpu.memory_space<vmem>>, vector<256x256xbf16>
    %cst_5 = arith.constant dense<0.000000e+00> : vector<64x256xf32>
    %15 = tpu.matmul %13, %14, %cst_5 {dimension_numbers = #tpu.dot_dimension_numbers<[1], [0], [0], [1], [0, 0, 1, 1], [], []>} : vector<64x256xbf16>, vector<256x256xbf16>, vector<64x256xf32> -> vector<64x256xf32>
    %16 = vector.broadcast %4 : vector<1x256xf32> to vector<64x256xf32>
    %17 = arith.addf %15, %16 : vector<64x256xf32>
    %cst_6 = arith.constant 0.000000e+00 : f32
    %18 = vector.broadcast %cst_6 : f32 to vector<64x256xf32>
    %19 = arith.maximumf %17, %18 : vector<64x256xf32>
    %20 = arith.truncf %19 : vector<64x256xf32> to vector<64x256xbf16>
    %c0_7 = arith.constant 0 : index
    %c0_8 = arith.constant 0 : index
    %21 = vector.load %arg4[%c0_7, %c0_8] : memref<256x128xbf16, #tpu.memory_space<vmem>>, vector<256x128xbf16>
    %cst_9 = arith.constant dense<0.000000e+00> : vector<64x128xf32>
    %22 = tpu.matmul %20, %21, %cst_9 {dimension_numbers = #tpu.dot_dimension_numbers<[1], [0], [0], [1], [0, 0, 1, 1], [], []>} : vector<64x256xbf16>, vector<256x128xbf16>, vector<64x128xf32> -> vector<64x128xf32>
    %23 = vector.broadcast %5 : vector<1x128xf32> to vector<64x128xf32>
    %24 = arith.addf %22, %23 : vector<64x128xf32>
    %cst_10 = arith.constant 0.000000e+00 : f32
    %25 = vector.broadcast %cst_10 : f32 to vector<64x128xf32>
    %26 = arith.maximumf %24, %25 : vector<64x128xf32>
    %27 = arith.truncf %26 : vector<64x128xf32> to vector<64x128xbf16>
    %c0_11 = arith.constant 0 : index
    %c0_12 = arith.constant 0 : index
    %28 = vector.load %arg5[%c0_11, %c0_12] : memref<128x128xbf16, #tpu.memory_space<vmem>>, vector<128x128xbf16>
    %cst_13 = arith.constant dense<0.000000e+00> : vector<64x128xf32>
    %29 = tpu.matmul %27, %28, %cst_13 {dimension_numbers = #tpu.dot_dimension_numbers<[1], [0], [0], [1], [0, 0, 1, 1], [], []>} : vector<64x128xbf16>, vector<128x128xbf16>, vector<64x128xf32> -> vector<64x128xf32>
    %30 = arith.truncf %29 : vector<64x128xf32> to vector<64x128xbf16>
    %c0_14 = arith.constant 0 : index
    %c0_15 = arith.constant 0 : index
    %31 = vector.load %arg6[%c0_14, %c0_15] : memref<64x128xbf16, #tpu.memory_space<vmem>>, vector<64x128xbf16>
    tpu.vector_store %arg6[%c0_14, %c0_15], %30 {strides = array<i32>} : memref<64x128xbf16, #tpu.memory_space<vmem>>, vector<64x128xbf16>,
    return
  }
  func.func @transform_0(%arg0: i32) -> (i32, i32) {
    %c0_i32 = arith.constant 0 : i32
    %c0_i32_0 = arith.constant 0 : i32
    return %arg0, %c0_i32 : i32, i32
  }
  func.func @transform_1(%arg0: i32) -> (i32, i32) {
    %c0_i32 = arith.constant 0 : i32
    %c0_i32_0 = arith.constant 0 : i32
    %c0_i32_1 = arith.constant 0 : i32
    return %c0_i32, %c0_i32_0 : i32, i32
  }
  func.func @transform_2(%arg0: i32) -> (i32, i32) {
    %c0_i32 = arith.constant 0 : i32
    %c0_i32_0 = arith.constant 0 : i32
    %c0_i32_1 = arith.constant 0 : i32
    return %c0_i32, %c0_i32_0 : i32, i32
  }
  func.func @transform_3(%arg0: i32) -> (i32, i32) {
    %c0_i32 = arith.constant 0 : i32
    %c0_i32_0 = arith.constant 0 : i32
    %c0_i32_1 = arith.constant 0 : i32
    return %c0_i32, %c0_i32_0 : i32, i32
  }
  func.func @transform_4(%arg0: i32) -> (i32, i32) {
    %c0_i32 = arith.constant 0 : i32
    %c0_i32_0 = arith.constant 0 : i32
    %c0_i32_1 = arith.constant 0 : i32
    return %c0_i32, %c0_i32_0 : i32, i32
  }
  func.func @transform_5(%arg0: i32) -> (i32, i32) {
    %c0_i32 = arith.constant 0 : i32
    %c0_i32_0 = arith.constant 0 : i32
    return %arg0, %c0_i32 : i32, i32
  }
}

</mosaic_0001>

<bundles_post_ra>
// kernel: multi_feature_nn.1
= control target key start
LH: loop header
LB: loop body
LE: loop exit
PB: predicated region body
PF: predicated region fallthrough
CT: control target
= control target key end

     0   :  { %10 = vsyncpa [#allocation3], 0  ;;  %s1402_s0 = inlined_call_operand.vmem [shape: f32[64,1], index: 0, kind: input, shape index: {}]   ;;  %s1403_s1 = inlined_call_operand.hbm [shape: f32[4,256], index: 1, kind: input, shape index: {}]   ;;  %s1404_s2 = inlined_call_operand.hbm [shape: bf16[256,256], index: 2, kind: input, shape index: {}]   ;;  %s1405_s3 = inlined_call_operand.hbm [shape: bf16[256,128], index: 3, kind: input, shape index: {}]   ;;  %s1406_s4 = inlined_call_operand.vmem [shape: bf16[128,128], index: 4, kind: input, shape index: {}]   ;;  %s1407_s5 = inlined_call_operand.vmem [shape: bf16[64,128], index: 5, kind: output, shape index: {}]  }
   0x1   :  { %11 = vsyncpa [#allocation5], 0  ;;  %s29_s20 = sshll.u32 %s1404_s2, 4  ;;  %s1249_s21 = smov [#allocation4]   ;;  %s30_s20 = int_to_ptr.hbm [resolvable:$true] %s29_s20 }
   0x2   :  { %s31_s22 = sshll.u32 %s1249_s21, 4  ;;  %s19_s25 = sshll.u32 %s1403_s1, 4  ;;  %s32_s22 = int_to_ptr.vmem [resolvable:$true] %s31_s22  ;;  %s20_s25 = int_to_ptr.hbm [resolvable:$true] %s19_s25 }
   0x3   :  { %s1250_s26 = smov 128   ;;  %s1251_s27 = smov 8  }
   0x4   :  { %37 = dma.hbm_to_vmem [thread:$0]  %s30_s20, 4096, %s32_s22, [#allocation5], %s1250_s26, %s1250_s26, %s1251_s27  }
   0x5   :  { %s1252_s28 = smov [#allocation2]   ;;  %s42_s7 = sshll.u32 %s1405_s3, 4  ;;  %s43_s7 = int_to_ptr.hbm [resolvable:$true] %s42_s7 }
   0x6   :  { %s21_s29 = sshll.u32 %s1252_s28, 4  ;;  %s1253_s2 = smov [#allocation6]   ;;  %s22_s29 = int_to_ptr.vmem [resolvable:$true] %s21_s29 }
   0x7   :  { %24 = dma.hbm_to_vmem [thread:$0]  %s20_s25, 128, %s22_s29, [#allocation3]  }
   0x8   :  { %s44_s8 = sshll.u32 %s1253_s2, 4  ;;  %s1254_s9 = smov 64   ;;  %s45_s8 = int_to_ptr.vmem [resolvable:$true] %s44_s8 }
   0x9   :  { %s1255_s10 = smov 4  }
   0xa   :  { %50 = dma.hbm_to_vmem [thread:$0]  %s43_s7, 2048, %s45_s8, [#allocation5], %s1254_s9, %s1254_s9, %s1255_s10  }
   0xb   :  { %1245 = dma.done.wait [#allocation3], 128  }
   0xc   :  { %1246 = vsyncadd [#allocation3], 4294967168 }
   0xd   :  { %1247 = dma.done.wait [#allocation5], 6144  }
   0xe   :  { %1248 = vsyncadd [#allocation5], 4294961152  ;;  %v1256_v0 = vmov 0   ;;  %v69_v1 = vld [vmem:[%s1402_s0 + $0x20] sm:$0xff]  ;;  %v67_v3 = vld [vmem:[%s1402_s0 + $0x10] sm:$0xff] }
   0xf   :  { %1171 = vset.pattern.permute.xlu1 %v1256_v0  ;;  %1170 = vset.pattern.permute.xlu0 %v1256_v0  ;;  %v65_v2 = vld [vmem:[%s1402_s0] sm:$0xff]  ;;  %v893_v4 = vld [vmem:[#allocation4 + $0x70] sm:$0xf]  ;;  %v70_v8 = vld [vmem:[%s1402_s0 + $0x28] sm:$0xff] }
  0x10   :  { %1172 = vset.pattern.permute.xlu2 %v1256_v0  ;;  %96 = vperm.xlu1 %1171, %v69_v1   ;;  %v1074_v5 = vld [vmem:[#allocation4 + $0x74] sm:$0xf0]  ;;  %v957_v6 = vld [vmem:[#allocation4 + $0xf0] sm:$0xf]  ;;  %v1073_v11 = vld [vmem:[#allocation4 + $0x74] sm:$0xf] }
  0x11   :  { %76 = vperm.xlu0 %1170, %v65_v2   ;;  %86 = vperm.xlu2 %1172, %v67_v3   ;;  %v1090_v7 = vld [vmem:[#allocation4 + $0xf4] sm:$0xf0]  ;;  %v894_v9 = vor.u32 %v1074_v5, %v893_v4  ;;  %v895_v12 = vld [vmem:[#allocation4 + $0x78] sm:$0xf0]  ;;  %v885_v13 = vld [vmem:[#allocation4 + $0x60] sm:$0xf] }
  0x12   :  { %v958_v10 = vor.u32 %v1090_v7, %v957_v6  ;;  %v898_v14 = vor.u32 %v1073_v11, %v895_v12  ;;  %v1072_v15 = vld [vmem:[#allocation4 + $0x64] sm:$0xf0]  ;;  %v949_v16 = vld [vmem:[#allocation4 + $0xe0] sm:$0xf]  ;;  %v1071_v20 = vld [vmem:[#allocation4 + $0x64] sm:$0xf] }
  0x13   :  { %v1088_v17 = vld [vmem:[#allocation4 + $0xe4] sm:$0xf0]  ;;  %v66_v18 = vld [vmem:[%s1402_s0 + $0x8] sm:$0xff]  ;;  %381 = vmatpush.bf16.msra.mxu0 %v894_v9  ;;  %1138 = vmatpush.bf16.msra.mxu3 %v894_v9  ;;  %v886_v19 = vor.u32 %v1072_v15, %v885_v13  ;;  %v887_v21 = vld [vmem:[#allocation4 + $0x68] sm:$0xf0] }
  0x14   :  { %410 = vmatpush.bf16.msra.mxu1 %v958_v10  ;;  %439 = vmatpush.bf16.msra.mxu2 %v898_v14  ;;  %v950_v22 = vor.u32 %v1088_v17, %v949_v16  ;;  %v877_v23 = vld [vmem:[#allocation4 + $0x50] sm:$0xf]  ;;  %v1070_v24 = vld [vmem:[#allocation4 + $0x54] sm:$0xf0]  ;;  %v890_v26 = vor.u32 %v1071_v20, %v887_v21  ;;  %v1069_v29 = vld [vmem:[#allocation4 + $0x54] sm:$0xf] }
  0x15   :  { %v68_v25 = vld [vmem:[%s1402_s0 + $0x18] sm:$0xff]  ;;  %v1086_v28 = vld [vmem:[#allocation4 + $0xd4] sm:$0xf0]  ;;  %v879_v30 = vld [vmem:[#allocation4 + $0x58] sm:$0xf0]  ;;  %v878_v31 = vor.u32 %v1070_v24, %v877_v23 }
  0x16   :  { %v941_v27 = vld [vmem:[#allocation4 + $0xd0] sm:$0xf]  ;;  %v869_v33 = vld [vmem:[#allocation4 + $0x40] sm:$0xf]  ;;  %v1068_v34 = vld [vmem:[#allocation4 + $0x44] sm:$0xf0]  ;;  %v882_v35 = vor.u32 %v1069_v29, %v879_v30 }
  0x17   :  { %382 = vmatpush.bf16.msra.mxu0 %v886_v19  ;;  %1139 = vmatpush.bf16.msra.mxu3 %v886_v19  ;;  %v942_v32 = vor.u32 %v1086_v28, %v941_v27  ;;  %v933_v36 = vld [vmem:[#allocation4 + $0xc0] sm:$0xf]  ;;  %v1084_v37 = vld [vmem:[#allocation4 + $0xc4] sm:$0xf0]  ;;  %v1067_v38 = vld [vmem:[#allocation4 + $0x44] sm:$0xf]  ;;  %v870_v42 = vor.u32 %v1068_v34, %v869_v33 }
  0x18   :  { %101 = vperm.xlu1 %1171, %v70_v8   ;;  %411 = vmatpush.bf16.msra.mxu1 %v950_v22  ;;  %v871_v39 = vld [vmem:[#allocation4 + $0x48] sm:$0xf0]  ;;  %v72_v40 = vld [vmem:[%s1402_s0 + $0x38] sm:$0xff]  ;;  %v934_v43 = vor.u32 %v1084_v37, %v933_v36  ;;  %v1066_v46 = vld [vmem:[#allocation4 + $0x34] sm:$0xf0] }
  0x19   :  { %81 = vperm.xlu0 %1170, %v66_v18   ;;  %91 = vperm.xlu2 %1172, %v68_v25   ;;  %v71_v41 = vld [vmem:[%s1402_s0 + $0x30] sm:$0xff]  ;;  %v874_v44 = vor.u32 %v1067_v38, %v871_v39  ;;  %v861_v45 = vld [vmem:[#allocation4 + $0x30] sm:$0xf]  ;;  %v1082_v49 = vld [vmem:[#allocation4 + $0xb4] sm:$0xf0] }
  0x1a   :  { %440 = vmatpush.bf16.msra.mxu2 %v890_v26  ;;  %v925_v47 = vld [vmem:[#allocation4 + $0xb0] sm:$0xf]  ;;  %v862_v48 = vor.u32 %v1066_v46, %v861_v45  ;;  %v1065_v50 = vld [vmem:[#allocation4 + $0x34] sm:$0xf]  ;;  %v863_v51 = vld [vmem:[#allocation4 + $0x38] sm:$0xf0] }
  0x1b   :  { %383 = vmatpush.bf16.msra.mxu0 %v878_v31  ;;  %1140 = vmatpush.bf16.msra.mxu3 %v878_v31  ;;  %v926_v52 = vor.u32 %v1082_v49, %v925_v47  ;;  %v866_v53 = vor.u32 %v1065_v50, %v863_v51  ;;  %v853_v54 = vld [vmem:[#allocation4 + $0x20] sm:$0xf]  ;;  %v1064_v55 = vld [vmem:[#allocation4 + $0x24] sm:$0xf0]  ;;  %v1063_v59 = vld [vmem:[#allocation4 + $0x24] sm:$0xf] }
  0x1c   :  { %412 = vmatpush.bf16.msra.mxu1 %v942_v32  ;;  %v917_v56 = vld [vmem:[#allocation4 + $0xa0] sm:$0xf]  ;;  %v854_v57 = vor.u32 %v1064_v55, %v853_v54  ;;  %v1080_v58 = vld [vmem:[#allocation4 + $0xa4] sm:$0xf0]  ;;  %v855_v60 = vld [vmem:[#allocation4 + $0x28] sm:$0xf0] }
  0x1d   :  { %v918_v61 = vor.u32 %v1080_v58, %v917_v56  ;;  %v858_v62 = vor.u32 %v1063_v59, %v855_v60  ;;  %v845_v63 = vld [vmem:[#allocation4 + $0x10] sm:$0xf]  ;;  %v1062_v0 = vld [vmem:[#allocation4 + $0x14] sm:$0xf0]  ;;  %v1061_v4 = vld [vmem:[#allocation4 + $0x14] sm:$0xf] }
  0x1e   :  { %441 = vmatpush.bf16.msra.mxu2 %v882_v35  ;;  %v909_v1 = vld [vmem:[#allocation4 + $0x90] sm:$0xf]  ;;  %v846_v2 = vor.u32 %v1062_v0, %v845_v63  ;;  %v1078_v3 = vld [vmem:[#allocation4 + $0x94] sm:$0xf0]  ;;  %v847_v5 = vld [vmem:[#allocation4 + $0x18] sm:$0xf0] }
  0x1f   :  { %384 = vmatpush.bf16.msra.mxu0 %v870_v42  ;;  %1141 = vmatpush.bf16.msra.mxu3 %v870_v42  ;;  %v910_v6 = vor.u32 %v1078_v3, %v909_v1  ;;  %v850_v7 = vor.u32 %v1061_v4, %v847_v5  ;;  %v837_v8 = vld [vmem:[#allocation4] sm:$0xf]  ;;  %v1060_v9 = vld [vmem:[#allocation4 + $0x4] sm:$0xf0]  ;;  %v1059_v13 = vld [vmem:[#allocation4 + $0x4] sm:$0xf] }
  0x20   :  { %111 = vperm.xlu1 %1171, %v72_v40   ;;  %413 = vmatpush.bf16.msra.mxu1 %v934_v43  ;;  %v901_v10 = vld [vmem:[#allocation4 + $0x80] sm:$0xf]  ;;  %v838_v11 = vor.u32 %v1060_v9, %v837_v8  ;;  %v1076_v12 = vld [vmem:[#allocation4 + $0x84] sm:$0xf0]  ;;  %v839_v14 = vld [vmem:[#allocation4 + $0x8] sm:$0xf0] }
  0x21   :  { %106 = vperm.xlu0 %1170, %v71_v41   ;;  %v902_v15 = vor.u32 %v1076_v12, %v901_v10  ;;  %v842_v16 = vor.u32 %v1059_v13, %v839_v14  ;;  %v1089_v17 = vld [vmem:[#allocation4 + $0xf4] sm:$0xf]  ;;  %v959_v18 = vld [vmem:[#allocation4 + $0xf8] sm:$0xf0]  ;;  %v1087_v20 = vld [vmem:[#allocation4 + $0xe4] sm:$0xf] }
  0x22   :  { %442 = vmatpush.bf16.msra.mxu2 %v874_v44  ;;  %v962_v19 = vor.u32 %v1089_v17, %v959_v18  ;;  %v951_v21 = vld [vmem:[#allocation4 + $0xe8] sm:$0xf0]  ;;  %v1085_v22 = vld [vmem:[#allocation4 + $0xd4] sm:$0xf]  ;;  %v943_v24 = vld [vmem:[#allocation4 + $0xd8] sm:$0xf0] }
  0x23   :  { %385 = vmatpush.bf16.msra.mxu0 %v862_v48  ;;  %1142 = vmatpush.bf16.msra.mxu3 %v862_v48  ;;  %v954_v23 = vor.u32 %v1087_v20, %v951_v21  ;;  %v946_v25 = vor.u32 %v1085_v22, %v943_v24  ;;  %v1320_v26 = vld [vmem:[#allocation2] sm:$0xff]  ;;  %v1083_v27 = vld [vmem:[#allocation4 + $0xc4] sm:$0xf]  ;;  %v935_v28 = vld [vmem:[#allocation4 + $0xc8] sm:$0xf0] }
  0x24   :  { %414 = vmatpush.bf16.msra.mxu1 %v926_v52  ;;  %v115_v29 = vperm.slane %v1320_v26, 0  ;;  %v938_v30 = vor.u32 %v1083_v27, %v935_v28  ;;  %v116_v31 = vperm.slane %v1320_v26, 4  ;;  %v137_v33 = vperm.slane %v1320_v26, 1  ;;  %v1081_v38 = vld [vmem:[#allocation4 + $0xb4] sm:$0xf] }
  0x25   :  { %v138_v37 = vperm.slane %v1320_v26, 5  ;;  %v927_v39 = vld [vmem:[#allocation4 + $0xb8] sm:$0xf0]  ;;  %v1079_v42 = vld [vmem:[#allocation4 + $0xa4] sm:$0xf] }
  0x26   :  { %443 = vmatpush.bf16.msra.mxu2 %v866_v53  ;;  %v119_v32 = vperm.slane %v115_v29, 0  ;;  %v1327_v36 = vperm.slane %v116_v31, 0  ;;  %v930_v40 = vor.u32 %v1081_v38, %v927_v39  ;;  %v919_v43 = vld [vmem:[#allocation4 + $0xa8] sm:$0xf0]  ;;  %v141_v44 = vperm.slane %v137_v33, 1 }
  0x27   :  { %386 = vmatpush.bf16.msra.mxu0 %v854_v57  ;;  %1143 = vmatpush.bf16.msra.mxu3 %v854_v57  ;;  %v922_v46 = vor.u32 %v1079_v42, %v919_v43  ;;  %v1331_v47 = vperm.slane %v138_v37, 1  ;;  %v1077_v49 = vld [vmem:[#allocation4 + $0x94] sm:$0xf]  ;;  %v911_v50 = vld [vmem:[#allocation4 + $0x98] sm:$0xf0] }
  0x28   :  { %415 = vmatpush.bf16.msra.mxu1 %v918_v61  ;;  %v914_v56 = vor.u32 %v1077_v49, %v911_v50  ;;  %v1075_v61 = vld [vmem:[#allocation4 + $0x84] sm:$0xf] }
  0x2a   :  { %444 = vmatpush.bf16.msra.mxu2 %v858_v62  ;;  %v903_v62 = vld [vmem:[#allocation4 + $0x88] sm:$0xf0] }
  0x2b   :  { %387 = vmatpush.bf16.msra.mxu0 %v846_v2  ;;  %1144 = vmatpush.bf16.msra.mxu3 %v846_v2  ;;  %v906_v4 = vor.u32 %v1075_v61, %v903_v62  ;;  %v1105_v61 = vld [vmem:[#allocation6 + $0x70] sm:$0xff] }
  0x2c   :  { %416 = vmatpush.bf16.msra.mxu1 %v910_v6 }
  0x2e   :  { %445 = vmatpush.bf16.msra.mxu2 %v850_v7 }
  0x2f   :  { %388 = vmatpush.bf16.msra.mxu0 %v838_v11  ;;  %1145 = vmatpush.bf16.msra.mxu3 %v838_v11 }
  0x30   :  { %417 = vmatpush.bf16.msra.mxu1 %v902_v15 }
  0x32   :  { %446 = vmatpush.bf16.msra.mxu2 %v842_v16 }
  0x33   :  { %468 = vmatpush.bf16.msrb.mxu3 %v962_v19 }
  0x37   :  { %469 = vmatpush.bf16.msrb.mxu3 %v954_v23 }
  0x3b   :  { %470 = vmatpush.bf16.msrb.mxu3 %v946_v25 }
  0x3f   :  { %471 = vmatpush.bf16.msrb.mxu3 %v938_v30 }
  0x43   :  { %472 = vmatpush.bf16.msrb.mxu3 %v930_v40 }
  0x47   :  { %473 = vmatpush.bf16.msrb.mxu3 %v922_v46 }
  0x4b   :  { %474 = vmatpush.bf16.msrb.mxu3 %v914_v56  ;;  %v1095_v56 = vld [vmem:[#allocation6 + $0x20] sm:$0xff] }
  0x4f   :  { %475 = vmatpush.bf16.msrb.mxu3 %v906_v4 }
  0x6b   :  { %v87_v51 = vpop.permute.xlu2 %86 }
  0x6c   :  { %v125_v15 = vmul.f32 %v119_v32, %v87_v51  ;;  %v126_v17 = vmul.f32 %v1327_v36, %v87_v51 }
  0x6e   :  { %v147_v21 = vadd.f32 %v141_v44, %v125_v15  ;;  %v148_v23 = vadd.f32 %v1331_v47, %v126_v17 }
  0x70   :  { %v163_v29 = vmax.f32 %v147_v21, 0.0 }
  0x73   :  { %v92_v12 = vpop.permute.xlu2 %91 }
  0x74   :  { %v127_v16 = vmul.f32 %v119_v32, %v92_v12  ;;  %v128_v19 = vmul.f32 %v1327_v36, %v92_v12 }
  0x76   :  { %v149_v22 = vadd.f32 %v141_v44, %v127_v16  ;;  %v150_v25 = vadd.f32 %v1331_v47, %v128_v19  ;;  %v1102_v16 = vld [vmem:[#allocation6 + $0x58] sm:$0xff] }
  0x78   :  { %v165_v28 = vmax.f32 %v149_v22, 0.0  ;;  %v166_v31 = vmax.f32 %v150_v25, 0.0 }
  0x7a   :  { %v177_v37 = vpack.c.bf16 %v165_v28, %v163_v29  ;;  %v1100_v29 = vld [vmem:[#allocation6 + $0x48] sm:$0xff] }
  0x82   :  { %v1325_v34 = vpop.permute.xlu1 %96 }
  0x83   :  { %v77_v35 = vpop.permute.xlu0 %76  ;;  %v129_v41 = vmul.f32 %v119_v32, %v1325_v34 }
  0x84   :  { %v121_v45 = vmul.f32 %v119_v32, %v77_v35  ;;  %v122_v48 = vmul.f32 %v1327_v36, %v77_v35  ;;  %v164_v35 = vmax.f32 %v148_v23, 0.0 }
  0x85   :  { %v151_v52 = vadd.f32 %v141_v44, %v129_v41 }
  0x86   :  { %v143_v53 = vadd.f32 %v141_v44, %v121_v45  ;;  %v144_v57 = vadd.f32 %v1331_v47, %v122_v48  ;;  %v178_v39 = vpack.c.bf16 %v166_v31, %v164_v35 }
  0x87   :  { %v167_v2 = vmax.f32 %v151_v52, 0.0 }
  0x88   :  { %v159_v3 = vmax.f32 %v143_v53, 0.0  ;;  %v160_v7 = vmax.f32 %v144_v57, 0.0  ;;  %v1098_v53 = vld [vmem:[#allocation6 + $0x38] sm:$0xff]  ;;  %v1093_v57 = vld [vmem:[#allocation6 + $0x10] sm:$0xff] }
  0x89   :  { %650 = vmatpush.bf16.msrb.mxu0 %v1098_v53 }
  0x8a   :  { %v102_v54 = vpop.permute.xlu1 %101 }
  0x8b   :  { %v82_v55 = vpop.permute.xlu0 %81  ;;  %v131_v58 = vmul.f32 %v119_v32, %v102_v54  ;;  %v132_v40 = vmul.f32 %v1327_v36, %v102_v54  ;;  %v1097_v54 = vld [vmem:[#allocation6 + $0x30] sm:$0xff] }
  0x8c   :  { %v123_v59 = vmul.f32 %v119_v32, %v82_v55  ;;  %v124_v60 = vmul.f32 %v1327_v36, %v82_v55  ;;  %v1096_v55 = vld [vmem:[#allocation6 + $0x28] sm:$0xff] }
  0x8d   :  { %v153_v63 = vadd.f32 %v141_v44, %v131_v58  ;;  %v154_v42 = vadd.f32 %v1331_v47, %v132_v40  ;;  %651 = vmatpush.bf16.msrb.mxu0 %v1097_v54  ;;  %v1091_v58 = vld [vmem:[#allocation6] sm:$0xff] }
  0x8e   :  { %v145_v0 = vadd.f32 %v141_v44, %v123_v59  ;;  %v146_v1 = vadd.f32 %v1331_v47, %v124_v60  ;;  %v1106_v59 = vld [vmem:[#allocation6 + $0x78] sm:$0xff]  ;;  %v215_v60 = vperm.slane %v1320_v26, 2 }
  0x8f   :  { %v169_v6 = vmax.f32 %v153_v63, 0.0  ;;  %1146 = vmatpush.bf16.msrb.mxu1 %v1106_v59 }
  0x90   :  { %v161_v5 = vmax.f32 %v145_v0, 0.0  ;;  %v162_v8 = vmax.f32 %v146_v1, 0.0  ;;  %v1351_v63 = vperm.slane %v215_v60, 2  ;;  %v1104_v1 = vld [vmem:[#allocation6 + $0x68] sm:$0xff] }
  0x91   :  { %v179_v10 = vpack.c.bf16 %v169_v6, %v167_v2  ;;  %652 = vmatpush.bf16.msrb.mxu0 %v1096_v55 }
  0x92   :  { %v175_v9 = vpack.c.bf16 %v161_v5, %v159_v3  ;;  %v176_v11 = vpack.c.bf16 %v162_v8, %v160_v7  ;;  %v112_v13 = vpop.permute.xlu1 %111 }
  0x93   :  { %v107_v14 = vpop.permute.xlu0 %106  ;;  %399 = vmatmul.bf16.vlgmr.msra.gmra.mxu3 %v179_v10  ;;  %v135_v18 = vmul.f32 %v119_v32, %v112_v13  ;;  %v136_v46 = vmul.f32 %v1327_v36, %v112_v13  ;;  %1147 = vmatpush.bf16.msrb.mxu1 %v1105_v61 }
  0x94   :  { %389 = vmatmul.bf16.vlgmr.msra.gmra.mxu0 %v175_v9  ;;  %418 = vmatmul.bf16.vlgmr.msra.gmra.mxu1 %v176_v11  ;;  %v133_v20 = vmul.f32 %v119_v32, %v107_v14  ;;  %v130_v32 = vmul.f32 %v1327_v36, %v1325_v34  ;;  %v134_v48 = vmul.f32 %v1327_v36, %v107_v14  ;;  %v1094_v36 = vld [vmem:[#allocation6 + $0x18] sm:$0xff] }
  0x95   :  { %447 = vmatmul.bf16.vlgmr.msra.gmra.mxu2 %v175_v9  ;;  %v157_v24 = vadd.f32 %v141_v44, %v135_v18  ;;  %v158_v49 = vadd.f32 %v1331_v47, %v136_v46  ;;  %653 = vmatpush.bf16.msrb.mxu0 %v1095_v56  ;;  %v1103_v9 = vld [vmem:[#allocation6 + $0x60] sm:$0xff] }
  0x96   :  { %v155_v27 = vadd.f32 %v141_v44, %v133_v20  ;;  %v152_v41 = vadd.f32 %v1331_v47, %v130_v32  ;;  %v170_v44 = vmax.f32 %v154_v42, 0.0  ;;  %v156_v34 = vadd.f32 %v1331_v47, %v134_v48  ;;  %v1092_v47 = vld [vmem:[#allocation6 + $0x8] sm:$0xff] }
  0x97   :  { %v173_v30 = vmax.f32 %v157_v24, 0.0  ;;  %v174_v50 = vmax.f32 %v158_v49, 0.0  ;;  %1148 = vmatpush.bf16.msrb.mxu1 %v1104_v1  ;;  %v1101_v24 = vld [vmem:[#allocation6 + $0x50] sm:$0xff] }
  0x98   :  { %v171_v33 = vmax.f32 %v155_v27, 0.0  ;;  %v168_v43 = vmax.f32 %v152_v41, 0.0  ;;  %v172_v51 = vmax.f32 %v156_v34, 0.0 }
  0x99   :  { %654 = vmatpush.bf16.msrb.mxu0 %v1094_v36 }
  0x9a   :  { %v181_v38 = vpack.c.bf16 %v173_v30, %v171_v33  ;;  %v180_v45 = vpack.c.bf16 %v170_v44, %v168_v43  ;;  %v182_v52 = vpack.c.bf16 %v174_v50, %v172_v51  ;;  %v216_v50 = vperm.slane %v1320_v26, 6 }
  0x9b   :  { %1149 = vmatpush.bf16.msrb.mxu1 %v1103_v9 }
  0x9c   :  { %v220_v56 = vperm.slane %v216_v50, 2 }
  0x9d   :  { %655 = vmatpush.bf16.msrb.mxu0 %v1093_v57 }
  0x9f   :  { %1150 = vmatpush.bf16.msrb.mxu1 %v1102_v16 }
  0xa1   :  { %656 = vmatpush.bf16.msrb.mxu0 %v1092_v47 }
  0xa3   :  { %404 = vmatmul.bf16.gmra.mxu3 %v181_v38  ;;  %1151 = vmatpush.bf16.msrb.mxu1 %v1101_v24 }
  0xa4   :  { %394 = vmatmul.bf16.gmra.mxu0 %v177_v37  ;;  %423 = vmatmul.bf16.gmra.mxu1 %v178_v39 }
  0xa5   :  { %452 = vmatmul.bf16.gmra.mxu2 %v177_v37  ;;  %657 = vmatpush.bf16.msrb.mxu0 %v1091_v58  ;;  %v1099_v37 = vld [vmem:[#allocation6 + $0x40] sm:$0xff] }
  0xa7   :  { %1152 = vmatpush.bf16.msrb.mxu1 %v1100_v29 }
  0xa9   :  { %679 = vmatpush.bf16.msra.mxu0 %v1106_v59 }
  0xab   :  { %1153 = vmatpush.bf16.msrb.mxu1 %v1099_v37 }
  0xad   :  { %680 = vmatpush.bf16.msra.mxu0 %v1105_v61 }
  0xb1   :  { %681 = vmatpush.bf16.msra.mxu0 %v1104_v1 }
  0xb3   :  { %476 = vmatmul.bf16.vlgmr.msrb.gmra.mxu3 %v176_v11 }
  0xb4   :  { %428 = vmatmul.bf16.gmra.mxu1 %v180_v45 }
  0xb5   :  { %457 = vmatmul.bf16.gmra.mxu2 %v179_v10  ;;  %682 = vmatpush.bf16.msra.mxu0 %v1103_v9 }
  0xb9   :  { %683 = vmatpush.bf16.msra.mxu0 %v1102_v16 }
  0xbd   :  { %684 = vmatpush.bf16.msra.mxu0 %v1101_v24 }
  0xc1   :  { %685 = vmatpush.bf16.msra.mxu0 %v1100_v29 }
  0xc3   :  { %481 = vmatmul.bf16.gmra.mxu3 %v178_v39 }
  0xc4   :  { %433 = vmatmul.bf16.gmra.mxu1 %v182_v52 }
  0xc5   :  { %462 = vmatmul.bf16.gmra.mxu2 %v181_v38  ;;  %686 = vmatpush.bf16.msra.mxu0 %v1099_v37  ;;  %v1113_v37 = vld [vmem:[%s1406_s4 + $0x30] sm:$0xff] }
  0xd3   :  { %486 = vmatmul.bf16.gmra.mxu3 %v180_v45 }
  0xe3   :  { %491 = vmatmul.bf16.gmra.mxu3 %v182_v52 }
 0x111   :  { %v390_v62 = vpop.f32.mrf.mxu0  ;;  %v419_v0 = vpop.f32.mrf.mxu1 }
 0x112   :  { %v391_v2 = vadd.f32 %v390_v62, %v1351_v63 }
 0x114   :  { %v420_v5 = vadd.f32 %v419_v0, %v391_v2 }
 0x116   :  { %v400_v3 = vpop.f32.mrf.mxu3  ;;  %v497_v10 = vmax.f32 %v420_v5, 0.0 }
 0x117   :  { %v401_v38 = vadd.f32 %v400_v3, %v1351_v63 }
 0x118   :  { %v1355_v17 = vpop.f32.mrf.mxu2 }
 0x119   :  { %v392_v4 = vpop.f32.mrf.mxu0  ;;  %v421_v7 = vpop.f32.mrf.mxu1 }
 0x11a   :  { %v393_v6 = vadd.f32 %v392_v4, %v1351_v63 }
 0x11c   :  { %v422_v8 = vadd.f32 %v421_v7, %v393_v6 }
 0x11e   :  { %v499_v11 = vmax.f32 %v422_v8, 0.0  ;;  %v402_v13 = vpop.f32.mrf.mxu3 }
 0x11f   :  { %v403_v32 = vadd.f32 %v402_v13, %v1351_v63 }
 0x120   :  { %v513_v12 = vpack.c.bf16 %v499_v11, %v497_v10  ;;  %v450_v30 = vpop.f32.mrf.mxu2 }
 0x121   :  { %v395_v14 = vpop.f32.mrf.mxu0  ;;  %v424_v15 = vpop.f32.mrf.mxu1  ;;  %v451_v5 = vadd.f32 %v450_v30, %v220_v56 }
 0x122   :  { %658 = vmatmul.bf16.vlgmr.msrb.gmra.mxu0 %v513_v12  ;;  %v396_v18 = vadd.f32 %v395_v14, %v1351_v63 }
 0x124   :  { %v425_v21 = vadd.f32 %v424_v15, %v396_v18 }
 0x126   :  { %v405_v19 = vpop.f32.mrf.mxu3  ;;  %v501_v27 = vmax.f32 %v425_v21, 0.0 }
 0x127   :  { %v406_v51 = vadd.f32 %v405_v19, %v1351_v63 }
 0x128   :  { %v453_v40 = vpop.f32.mrf.mxu2 }
 0x129   :  { %v397_v20 = vpop.f32.mrf.mxu0  ;;  %v426_v23 = vpop.f32.mrf.mxu1  ;;  %v454_v57 = vadd.f32 %v453_v40, %v220_v56 }
 0x12a   :  { %v398_v22 = vadd.f32 %v397_v20, %v1351_v63 }
 0x12c   :  { %v427_v25 = vadd.f32 %v426_v23, %v398_v22 }
 0x12e   :  { %v503_v28 = vmax.f32 %v427_v25, 0.0  ;;  %v407_v31 = vpop.f32.mrf.mxu3 }
 0x12f   :  { %v408_v53 = vadd.f32 %v407_v31, %v1351_v63  ;;  %v449_v63 = vadd.f32 %v1355_v17, %v220_v56 }
 0x130   :  { %v515_v33 = vpack.c.bf16 %v503_v28, %v501_v27  ;;  %v455_v34 = vpop.f32.mrf.mxu2 }
 0x131   :  { %v429_v35 = vpop.f32.mrf.mxu1  ;;  %v456_v60 = vadd.f32 %v455_v34, %v220_v56 }
 0x132   :  { %663 = vmatmul.bf16.gmra.mxu0 %v515_v33  ;;  %v430_v41 = vadd.f32 %v429_v35, %v401_v38  ;;  %v1114_v35 = vld [vmem:[%s1406_s4 + $0x38] sm:$0xff]  ;;  %v1112_v38 = vld [vmem:[%s1406_s4 + $0x28] sm:$0xff] }
 0x133   :  { %784 = vmatpush.bf16.msrb.mxu2 %v1114_v35  ;;  %1154 = vmatpush.bf16.msra.mxu3 %v1114_v35 }
 0x134   :  { %v505_v45 = vmax.f32 %v430_v41, 0.0  ;;  %v1110_v41 = vld [vmem:[%s1406_s4 + $0x18] sm:$0xff] }
 0x136   :  { %v477_v39 = vpop.f32.mrf.mxu3 }
 0x137   :  { %v478_v9 = vadd.f32 %v477_v39, %v449_v63  ;;  %785 = vmatpush.bf16.msrb.mxu2 %v1113_v37  ;;  %1155 = vmatpush.bf16.msra.mxu3 %v1113_v37 }
 0x138   :  { %v458_v58 = vpop.f32.mrf.mxu2 }
 0x139   :  { %v431_v42 = vpop.f32.mrf.mxu1  ;;  %v459_v11 = vadd.f32 %v458_v58, %v220_v56  ;;  %v498_v12 = vmax.f32 %v478_v9, 0.0 }
 0x13a   :  { %v432_v43 = vadd.f32 %v431_v42, %v403_v32  ;;  %v1111_v32 = vld [vmem:[%s1406_s4 + $0x20] sm:$0xff] }
 0x13b   :  { %786 = vmatpush.bf16.msrb.mxu2 %v1112_v38  ;;  %1156 = vmatpush.bf16.msra.mxu3 %v1112_v38 }
 0x13c   :  { %v507_v44 = vmax.f32 %v432_v43, 0.0 }
 0x13e   :  { %v479_v46 = vpop.f32.mrf.mxu3  ;;  %v517_v48 = vpack.c.bf16 %v507_v44, %v505_v45  ;;  %v1109_v44 = vld [vmem:[%s1406_s4 + $0x10] sm:$0xff] }
 0x13f   :  { %v480_v7 = vadd.f32 %v479_v46, %v451_v5  ;;  %787 = vmatpush.bf16.msrb.mxu2 %v1111_v32  ;;  %1157 = vmatpush.bf16.msra.mxu3 %v1111_v32  ;;  %v1108_v46 = vld [vmem:[%s1406_s4 + $0x8] sm:$0xff] }
 0x140   :  { %v460_v6 = vpop.f32.mrf.mxu2 }
 0x141   :  { %v434_v49 = vpop.f32.mrf.mxu1  ;;  %v500_v10 = vmax.f32 %v480_v7, 0.0  ;;  %v461_v13 = vadd.f32 %v460_v6, %v220_v56 }
 0x142   :  { %668 = vmatmul.bf16.gmra.mxu0 %v517_v48  ;;  %v435_v54 = vadd.f32 %v434_v49, %v406_v51  ;;  %v1107_v49 = vld [vmem:[%s1406_s4] sm:$0xff] }
 0x143   :  { %v514_v15 = vpack.c.bf16 %v500_v10, %v498_v12  ;;  %788 = vmatpush.bf16.msrb.mxu2 %v1110_v41  ;;  %1158 = vmatpush.bf16.msra.mxu3 %v1110_v41 }
 0x144   :  { %v509_v59 = vmax.f32 %v435_v54, 0.0  ;;  %v553_v54 = vperm.slane %v1320_v26, 3 }
 0x146   :  { %v482_v52 = vpop.f32.mrf.mxu3 }
 0x147   :  { %v483_v61 = vadd.f32 %v482_v52, %v454_v57  ;;  %789 = vmatpush.bf16.msrb.mxu2 %v1109_v44  ;;  %1159 = vmatpush.bf16.msra.mxu3 %v1109_v44 }
 0x148   :  { %v463_v19 = vpop.f32.mrf.mxu2 }
 0x149   :  { %v436_v55 = vpop.f32.mrf.mxu1  ;;  %v502_v2 = vmax.f32 %v483_v61, 0.0  ;;  %v464_v24 = vadd.f32 %v463_v19, %v220_v56 }
 0x14a   :  { %v437_v36 = vadd.f32 %v436_v55, %v408_v53 }
 0x14b   :  { %790 = vmatpush.bf16.msrb.mxu2 %v1108_v46  ;;  %1160 = vmatpush.bf16.msra.mxu3 %v1108_v46 }
 0x14c   :  { %v511_v47 = vmax.f32 %v437_v36, 0.0 }
 0x14e   :  { %v484_v62 = vpop.f32.mrf.mxu3  ;;  %v519_v0 = vpack.c.bf16 %v511_v47, %v509_v59 }
 0x14f   :  { %v485_v1 = vadd.f32 %v484_v62, %v456_v60  ;;  %791 = vmatpush.bf16.msrb.mxu2 %v1107_v49  ;;  %1161 = vmatpush.bf16.msra.mxu3 %v1107_v49 }
 0x150   :  { %v465_v17 = vpop.f32.mrf.mxu2 }
 0x151   :  { %v504_v3 = vmax.f32 %v485_v1, 0.0  ;;  %v466_v25 = vadd.f32 %v465_v17, %v220_v56 }
 0x152   :  { %673 = vmatmul.bf16.gmra.mxu0 %v519_v0 }
 0x153   :  { %v516_v4 = vpack.c.bf16 %v504_v3, %v502_v2 }
 0x155   :  { %692 = vmatmul.bf16.vlgmr.msrb.gmra.mxu1 %v516_v4 }
 0x156   :  { %v487_v8 = vpop.f32.mrf.mxu3 }
 0x157   :  { %v488_v14 = vadd.f32 %v487_v8, %v459_v11 }
 0x159   :  { %v506_v20 = vmax.f32 %v488_v14, 0.0 }
 0x15e   :  { %v489_v16 = vpop.f32.mrf.mxu3 }
 0x15f   :  { %v490_v18 = vadd.f32 %v489_v16, %v461_v13 }
 0x161   :  { %v508_v21 = vmax.f32 %v490_v18, 0.0 }
 0x162   :  { %687 = vmatmul.bf16.vlgmr.msra.gmra.mxu0 %v514_v15 }
 0x163   :  { %v518_v22 = vpack.c.bf16 %v508_v21, %v506_v20 }
 0x165   :  { %697 = vmatmul.bf16.gmra.mxu1 %v518_v22 }
 0x166   :  { %v492_v23 = vpop.f32.mrf.mxu3 }
 0x167   :  { %v493_v27 = vadd.f32 %v492_v23, %v464_v24 }
 0x169   :  { %v510_v30 = vmax.f32 %v493_v27, 0.0 }
 0x16e   :  { %v494_v28 = vpop.f32.mrf.mxu3 }
 0x16f   :  { %v495_v29 = vadd.f32 %v494_v28, %v466_v25 }
 0x171   :  { %v512_v31 = vmax.f32 %v495_v29, 0.0 }
 0x173   :  { %v520_v33 = vpack.c.bf16 %v512_v31, %v510_v30 }
 0x175   :  { %702 = vmatmul.bf16.gmra.mxu1 %v520_v33 }
 0x19f   :  { %v659_v39 = vpop.f32.mrf.mxu0 }
 0x1a0   :  { %v660_v55 = vadd.f32 %v659_v39, %v553_v54 }
 0x1a7   :  { %v661_v40 = vpop.f32.mrf.mxu0 }
 0x1a8   :  { %v662_v36 = vadd.f32 %v661_v40, %v553_v54 }
 0x1af   :  { %v664_v42 = vpop.f32.mrf.mxu0 }
 0x1b0   :  { %v665_v1 = vadd.f32 %v664_v42, %v553_v54 }
 0x1b7   :  { %v666_v43 = vpop.f32.mrf.mxu0 }
 0x1b8   :  { %v667_v0 = vadd.f32 %v666_v43, %v553_v54 }
 0x1bf   :  { %v669_v45 = vpop.f32.mrf.mxu0 }
 0x1c0   :  { %v670_v15 = vadd.f32 %v669_v45, %v553_v54 }
 0x1c7   :  { %v671_v48 = vpop.f32.mrf.mxu0 }
 0x1c8   :  { %v672_v14 = vadd.f32 %v671_v48, %v553_v54 }
 0x1cf   :  { %v674_v34 = vpop.f32.mrf.mxu0 }
 0x1d0   :  { %v675_v63 = vadd.f32 %v674_v34, %v553_v54 }
 0x1d2   :  { %v693_v50 = vpop.f32.mrf.mxu1 }
 0x1d3   :  { %v694_v4 = vadd.f32 %v693_v50, %v665_v1 }
 0x1d5   :  { %v710_v6 = vmax.f32 %v694_v4, 0.0 }
 0x1d7   :  { %v676_v51 = vpop.f32.mrf.mxu0 }
 0x1d8   :  { %v677_v26 = vadd.f32 %v676_v51, %v553_v54 }
 0x1da   :  { %v695_v52 = vpop.f32.mrf.mxu1 }
 0x1db   :  { %v696_v2 = vadd.f32 %v695_v52, %v667_v0 }
 0x1dd   :  { %v711_v5 = vmax.f32 %v696_v2, 0.0 }
 0x1df   :  { %v688_v53 = vpop.f32.mrf.mxu0  ;;  %v717_v9 = vpack.c.bf16 %v711_v5, %v710_v6 }
 0x1e0   :  { %v689_v57 = vadd.f32 %v688_v53, %v660_v55 }
 0x1e2   :  { %v698_v56 = vpop.f32.mrf.mxu1  ;;  %v708_v59 = vmax.f32 %v689_v57, 0.0 }
 0x1e3   :  { %v699_v18 = vadd.f32 %v698_v56, %v670_v15 }
 0x1e5   :  { %v712_v20 = vmax.f32 %v699_v18, 0.0 }
 0x1e7   :  { %v690_v47 = vpop.f32.mrf.mxu0 }
 0x1e8   :  { %v691_v58 = vadd.f32 %v690_v47, %v662_v36 }
 0x1ea   :  { %v709_v60 = vmax.f32 %v691_v58, 0.0  ;;  %v700_v62 = vpop.f32.mrf.mxu1 }
 0x1eb   :  { %v701_v16 = vadd.f32 %v700_v62, %v672_v14 }
 0x1ec   :  { %v716_v61 = vpack.c.bf16 %v709_v60, %v708_v59 }
 0x1ed   :  { %v713_v19 = vmax.f32 %v701_v16, 0.0 }
 0x1ee   :  { %792 = vmatmul.bf16.vlgmr.msrb.gmra.mxu2 %v716_v61 }
 0x1ef   :  { %v718_v21 = vpack.c.bf16 %v713_v19, %v712_v20 }
 0x1f2   :  { %v703_v3 = vpop.f32.mrf.mxu1 }
 0x1f3   :  { %v704_v7 = vadd.f32 %v703_v3, %v675_v63 }
 0x1f5   :  { %v714_v11 = vmax.f32 %v704_v7, 0.0 }
 0x1fa   :  { %v705_v8 = vpop.f32.mrf.mxu1 }
 0x1fb   :  { %v706_v10 = vadd.f32 %v705_v8, %v677_v26 }
 0x1fd   :  { %v715_v12 = vmax.f32 %v706_v10, 0.0 }
 0x1fe   :  { %797 = vmatmul.bf16.gmra.mxu2 %v717_v9 }
 0x1ff   :  { %v719_v13 = vpack.c.bf16 %v715_v12, %v714_v11 }
 0x201   :  { %807 = vmatmul.bf16.vlgmr.msra.gmra.mxu3 %v719_v13 }
 0x20e   :  { %802 = vmatmul.bf16.gmra.mxu2 %v718_v21 }
 0x271   :  { %v793_v22 = vpop.f32.mrf.mxu2 }
 0x279   :  { %v795_v23 = vpop.f32.mrf.mxu2 }
 0x27a   :  { %v1118_v17 = vpack.c.bf16 %v795_v23, %v793_v22 }
 0x27c   :  { %1119 = vst [vmem:[%s1407_s5] sm:$0xff] %v1118_v17  }
 0x281   :  { %v798_v24 = vpop.f32.mrf.mxu2 }
 0x284   :  { %v808_v25 = vpop.f32.mrf.mxu3 }
 0x289   :  { %v800_v27 = vpop.f32.mrf.mxu2 }
 0x28a   :  { %v1123_v28 = vpack.c.bf16 %v800_v27, %v798_v24 }
 0x28c   :  { %1135 = vst [vmem:[%s1407_s5 + $0x8] sm:$0xff] %v1123_v28   ;;  %v810_v29 = vpop.f32.mrf.mxu3 }
 0x28d   :  { %v1133_v30 = vpack.c.bf16 %v810_v29, %v808_v25 }
 0x28f   :  { %1137 = vst [vmem:[%s1407_s5 + $0x18] sm:$0xff] %v1133_v30  }
 0x291   :  { %v803_v31 = vpop.f32.mrf.mxu2 }
 0x299   :  { %v805_v33 = vpop.f32.mrf.mxu2 }
 0x29a   :  { %v1128_v35 = vpack.c.bf16 %v805_v33, %v803_v31 }
 0x29c   :  { %1136 = vst [vmem:[%s1407_s5 + $0x10] sm:$0xff] %v1128_v35  }
 0x29d   :  { %833 = vsyncpa [#allocation3], 1 }
 0x29e   :  { %834 = vsyncpa [#allocation5], 1 }

</bundles_post_ra>
